<compile_context>
chip_gen: v5e
topology: v5e:2x2
jax: 0.10.0
libtpu: 0.0.40
codegen_flags: <defaults>
</compile_context>

<pallas_src>
import functools

import jax
import jax.numpy as jnp
from jax.experimental import pallas as pl
from jax.experimental.pallas import tpu as pltpu

KERNEL_HEIGHTS = (2, 3, 4, 5)   # must be contiguous starting at 2 (mask trick)
K_MAX = max(KERNEL_HEIGHTS)


def _textcnn_kernel(x_ref, w_all_ref, b_all_ref, mask_ref, wl_ref, bl_ref,
                    out_ref, *, L, C):
    rows, Wv = x_ref.shape            # rows = batch_tile * L
    TB = rows // L
    KC = len(KERNEL_HEIGHTS) * C      # fused conv channels (4C)

    # Rolls + lane concat in f32 (bf16 sublane rolls would force packed
    # interleave/relayout); cast the patch matrix to the MXU dtype once.
    x = x_ref[...].astype(jnp.float32)                        # (rows, Wv)
    taps = [x] + [jnp.roll(x, -i, axis=0) for i in range(1, K_MAX)]
    patches = jnp.concatenate(taps, axis=1)                   # (rows, 5*Wv) f32
    patches = patches.astype(w_all_ref.dtype)

    # Single fused conv matmul for all 4 branches: K = 5*Wv, N = 4*C.
    conv = jnp.dot(patches, w_all_ref[...],
                   preferred_element_type=jnp.float32)        # (rows, 4C) f32

    # Additive validity mask (0 / -1e30) then max over L on the RAW logits.
    # sigmoid is monotone and the bias is position-independent, so
    # max(sigmoid(x + b)) == sigmoid(max(x) + b); L >= K_MAX guarantees at
    # least one unmasked position per branch.
    conv3 = conv.reshape(TB, L, KC) + mask_ref[...][None]     # one vadd
    feat = jnp.max(conv3, axis=1)                             # (TB, 4C)
    feat = jax.nn.sigmoid(feat + b_all_ref[...])              # only TB*4C EUP ops

    logits = jnp.dot(feat.astype(wl_ref.dtype), wl_ref[...],
                     preferred_element_type=jnp.float32) + bl_ref[...]
    out_ref[...] = jax.nn.sigmoid(logits).astype(out_ref.dtype)


def _default_batch_tile(B, L, sub, row_cap=4096):
    """Largest divisor of B whose tile is sublane-aligned, VMEM-safe (~4K rows
    for v7x's 64 MiB), gives an unmasked output store (tile>=8 or full batch),
    and (when possible) nb >= 2 so the parallel grid axis can shard / pipeline."""
    divs = [d for d in range(1, B + 1) if B % d == 0]
    ok = [d for d in divs
          if (d % 8 == 0 or d == B)                      # out block constraint
          and ((d * L) % sub == 0 or d == B)             # x block constraint
          and d * L <= row_cap]
    if not ok:                                           # tiny / odd batches
        ok = [d for d in divs
              if (d % 8 == 0 or d == B) and ((d * L) % sub == 0 or d == B)]
    multi = [d for d in ok if B // d >= 2]
    pool = multi if multi else ok
    aligned = [d for d in pool if (d * L) % 256 == 0]    # full MXU M passes
    return max(aligned) if aligned else max(pool)


@functools.partial(jax.jit, static_argnames=("mxu_dtype", "batch_tile"))
def textcnn_forward(x_nchw, params, *, mxu_dtype=jnp.float32, batch_tile=None):
    B, _, L, Wv = x_nchw.shape
    C = params["b2"].shape[1]
    O = params["bl"].shape[1]
    KC = len(KERNEL_HEIGHTS) * C

    # Mask trick assumes contiguous kernel heights starting at 2.
    assert KERNEL_HEIGHTS == tuple(range(2, 2 + len(KERNEL_HEIGHTS)))
    assert L >= K_MAX

    in_itemsize = jnp.dtype(mxu_dtype).itemsize
    sub = 16 if jnp.dtype(mxu_dtype) == jnp.dtype(jnp.bfloat16) else 8
    if batch_tile is None:
        batch_tile = _default_batch_tile(B, L, sub)
    assert B % batch_tile == 0
    assert (batch_tile * L) % sub == 0 or batch_tile == B, \
        "batch_tile*L must be sublane-aligned (8 f32 / 16 bf16) or cover B"
    assert batch_tile % 8 == 0 or batch_tile == B, \
        "output tile must be >= 8 rows (unmasked vst) or cover the full batch"
    nb = B // batch_tile
    rows = batch_tile * L

    # Fuse branch weights: zero-pad each (k*Wv, C) along the tap axis to
    # (5*Wv, C), concat on channels -> (5*Wv, 4C).  Biases concat to (1, 4C).
    # MXU operands optionally cast to bf16 (v6e/v7x); elementwise stays f32.
    w_all = jnp.concatenate(
        [jnp.pad(params[f"w{k}"], ((0, (K_MAX - k) * Wv), (0, 0)))
         for k in KERNEL_HEIGHTS], axis=1).astype(mxu_dtype)
    b_all = jnp.concatenate([params[f"b{k}"] for k in KERNEL_HEIGHTS],
                            axis=1).astype(jnp.float32)
    wl = params["wl"].astype(mxu_dtype)
    bl = params["bl"].astype(jnp.float32)

    # Precomputed additive validity mask (0 valid / -1e30 invalid), (L, 4C).
    row_idx = jnp.arange(L, dtype=jnp.int32)[:, None]
    k_of_col = jnp.arange(KC, dtype=jnp.int32)[None, :] // C + KERNEL_HEIGHTS[0]
    mask = jnp.where(row_idx <= (L - k_of_col), 0.0, -1e30).astype(jnp.float32)

    # Flatten batch into the sublane/row dim (no in-kernel batch loop).
    x2d = x_nchw[:, 0].reshape(B * L, Wv).astype(mxu_dtype)

    kernel = functools.partial(_textcnn_kernel, L=L, C=C)

    cost = pl.CostEstimate(
        flops=2 * B * L * (K_MAX * Wv) * KC + 2 * B * KC * O,
        transcendentals=B * KC + B * O,                  # max-before-sigmoid
        bytes_accessed=(x2d.size + w_all.size + wl.size) * in_itemsize
                       + (b_all.size + bl.size + mask.size + B * O) * 4,
    )

    # Explicit VMEM budget from the tile (double-buffered x / out, f32 patches
    # + conv intermediates, resident weights), clamped to v7x's 64 MiB.
    vmem_est = (
        2 * rows * Wv * in_itemsize                       # x tile x2 buffers
        + rows * K_MAX * Wv * (4 + in_itemsize)           # patches f32 + cast
        + rows * KC * 4                                   # conv logits
        + (K_MAX * Wv * KC + KC * O) * in_itemsize        # fused weights
        + (L * KC + 2 * KC + 2 * O) * 4                   # mask + biases
        + 2 * batch_tile * O * 4                          # out tile x2 buffers
    )
    vmem_limit = int(min(max(2 * vmem_est, 32 * 1024 * 1024), 64 * 1024 * 1024))

    # Deeper x pipeline only when there are enough grid steps to overlap.
    if nb >= 3:
        x_spec = pl.BlockSpec((rows, Wv), lambda i: (i, 0),
                              pipeline_mode=pl.Buffered(3))
    else:
        x_spec = pl.BlockSpec((rows, Wv), lambda i: (i, 0))

    return pl.pallas_call(
        kernel,
        out_shape=jax.ShapeDtypeStruct((B, O), jnp.float32),
        grid=(nb,),
        in_specs=[
            x_spec,
            pl.BlockSpec((K_MAX * Wv, KC), lambda i: (0, 0)),
            pl.BlockSpec((1, KC), lambda i: (0, 0)),
            pl.BlockSpec((L, KC), lambda i: (0, 0)),
            pl.BlockSpec((KC, O), lambda i: (0, 0)),
            pl.BlockSpec((1, O), lambda i: (0, 0)),
        ],
        out_specs=pl.BlockSpec((batch_tile, O), lambda i: (i, 0)),
        compiler_params=pltpu.CompilerParams(
            dimension_semantics=("parallel",),
            vmem_limit_bytes=vmem_limit),
        cost_estimate=cost,
    )(x2d, w_all, b_all, mask, wl, bl)


def init_params(key, word_vector_size, channels, output_size):
    """Normal-scale params (1/sqrt(fan_in)) so the numerics are exercised."""
    keys = jax.random.split(key, 10)
    params = {}
    for idx, k in enumerate(KERNEL_HEIGHTS):
        fan_in = k * word_vector_size
        # PyTorch Conv2d weight (C, 1, k, Wv) stored as (k*Wv, C):
        #   w[i*Wv + j, c] == w_torch[c, 0, i, j]
        params[f"w{k}"] = jax.random.normal(
            keys[2 * idx], (fan_in, channels), jnp.float32) / jnp.sqrt(fan_in)
        params[f"b{k}"] = 0.1 * jax.random.normal(
            keys[2 * idx + 1], (1, channels), jnp.float32)
    # PyTorch Linear weight (O, 4C) stored transposed as (4C, O).
    params["wl"] = jax.random.normal(
        keys[8], (4 * channels, output_size), jnp.float32) / jnp.sqrt(4 * channels)
    params["bl"] = 0.1 * jax.random.normal(keys[9], (1, output_size), jnp.float32)
    return params


def reference_forward(x_nchw, params):
    """Pure-JAX reference mirroring the PyTorch forward (per-branch, f32)."""
    x = x_nchw[:, 0]                                  # (B, L, Wv)
    B, L, Wv = x.shape
    hi = jax.lax.Precision.HIGHEST
    feats = []
    for k in KERNEL_HEIGHTS:
        w, b = params[f"w{k}"], params[f"b{k}"]
        T = L - k + 1
        patches = jnp.stack([x[:, i:i + T, :] for i in range(k)], axis=2)
        patches = patches.reshape(B, T, k * Wv)
        s = jax.nn.sigmoid(
            jnp.einsum("btd,dc->btc", patches, w, precision=hi) + b[None])
        feats.append(jnp.max(s, axis=1))              # (B, C)
    feat = jnp.concatenate(feats, axis=1)             # (B, 4C)
    return jax.nn.sigmoid(jnp.dot(feat, params["wl"], precision=hi)
                          + params["bl"])


if __name__ == "__main__":
    # Small shapes consistent with the module: sentence_size=(L, Wv), 4 conv
    # branches of C channels each (4C=128 lane-dense), Linear(4C -> O=128).
    B, L, Wv = 2, 16, 32
    C, O = 32, 128

    key = jax.random.PRNGKey(0)
    kx, kp = jax.random.split(key)
    x = jax.random.normal(kx, (B, 1, L, Wv), dtype=jnp.float32)
    params = init_params(kp, Wv, C, O)

    ref = jax.block_until_ready(reference_forward(x, params))

    out = jax.block_until_ready(textcnn_forward(x, params))
    assert out.shape == (B, O)
    assert jnp.allclose(out, ref, atol=1e-4, rtol=1e-4), "f32 kernel mismatch"

    # bf16 MXU-operand path (full-rate MXU on v6e/v7x; f32 accumulate/elementwise).
    out_bf16 = jax.block_until_ready(
        textcnn_forward(x, params, mxu_dtype=jnp.bfloat16))
    assert jnp.allclose(out_bf16, ref, atol=2e-2), "bf16 kernel mismatch"

    print("KERNEL_OK")
</pallas_src>

<mosaic_0001>
module attributes {stable_mosaic.version = 11 : i64} {
  func.func @_textcnn_kernel(%arg0: i32, %arg1: memref<32x32xf32, #tpu.memory_space<vmem>>, %arg2: memref<160x128xf32, #tpu.memory_space<vmem>>, %arg3: memref<1x128xf32, #tpu.memory_space<vmem>>, %arg4: memref<16x128xf32, #tpu.memory_space<vmem>>, %arg5: memref<128x128xf32, #tpu.memory_space<vmem>>, %arg6: memref<1x128xf32, #tpu.memory_space<vmem>>, %arg7: memref<2x128xf32, #tpu.memory_space<vmem>>) attributes {dimension_semantics = [#tpu.dimension_semantics<parallel>], iteration_bounds = array<i64: 1>, scalar_prefetch = 0 : i64, scratch_operands = 0 : i64, tpu.core_type = #tpu.core_type<tc>, window_params = [{transform_indices = @transform_0, window_bounds = array<i64: 32, 32>}, {pipeline_mode = #tpu.pipeline_mode<synchronous>, transform_indices = @transform_1, window_bounds = array<i64: 160, 128>}, {pipeline_mode = #tpu.pipeline_mode<synchronous>, transform_indices = @transform_2, window_bounds = array<i64: 1, 128>}, {pipeline_mode = #tpu.pipeline_mode<synchronous>, transform_indices = @transform_3, window_bounds = array<i64: 16, 128>}, {pipeline_mode = #tpu.pipeline_mode<synchronous>, transform_indices = @transform_4, window_bounds = array<i64: 128, 128>}, {pipeline_mode = #tpu.pipeline_mode<synchronous>, transform_indices = @transform_5, window_bounds = array<i64: 1, 128>}, {transform_indices = @transform_6, window_bounds = array<i64: 2, 128>}]} {
    %c0 = arith.constant 0 : index
    %c0_0 = arith.constant 0 : index
    %0 = vector.load %arg1[%c0, %c0_0] : memref<32x32xf32, #tpu.memory_space<vmem>>, vector<32x32xf32>
    %1 = vector.extract_strided_slice %0 {offsets = [1, 0], sizes = [31, 32], strides = [1, 1]} : vector<32x32xf32> to vector<31x32xf32>
    %2 = vector.extract_strided_slice %0 {offsets = [0, 0], sizes = [1, 32], strides = [1, 1]} : vector<32x32xf32> to vector<1x32xf32>
    %3 = tpu.concatenate %1, %2 in 0 : vector<31x32xf32>, vector<1x32xf32> -> vector<32x32xf32>
    %4 = vector.extract_strided_slice %0 {offsets = [2, 0], sizes = [30, 32], strides = [1, 1]} : vector<32x32xf32> to vector<30x32xf32>
    %5 = vector.extract_strided_slice %0 {offsets = [0, 0], sizes = [2, 32], strides = [1, 1]} : vector<32x32xf32> to vector<2x32xf32>
    %6 = tpu.concatenate %4, %5 in 0 : vector<30x32xf32>, vector<2x32xf32> -> vector<32x32xf32>
    %7 = vector.extract_strided_slice %0 {offsets = [3, 0], sizes = [29, 32], strides = [1, 1]} : vector<32x32xf32> to vector<29x32xf32>
    %8 = vector.extract_strided_slice %0 {offsets = [0, 0], sizes = [3, 32], strides = [1, 1]} : vector<32x32xf32> to vector<3x32xf32>
    %9 = tpu.concatenate %7, %8 in 0 : vector<29x32xf32>, vector<3x32xf32> -> vector<32x32xf32>
    %10 = vector.extract_strided_slice %0 {offsets = [4, 0], sizes = [28, 32], strides = [1, 1]} : vector<32x32xf32> to vector<28x32xf32>
    %11 = vector.extract_strided_slice %0 {offsets = [0, 0], sizes = [4, 32], strides = [1, 1]} : vector<32x32xf32> to vector<4x32xf32>
    %12 = tpu.concatenate %10, %11 in 0 : vector<28x32xf32>, vector<4x32xf32> -> vector<32x32xf32>
    %13 = tpu.concatenate %0, %3, %6, %9, %12 in 1 : vector<32x32xf32>, vector<32x32xf32>, vector<32x32xf32>, vector<32x32xf32>, vector<32x32xf32> -> vector<32x160xf32>
    %c0_1 = arith.constant 0 : index
    %c0_2 = arith.constant 0 : index
    %14 = vector.load %arg2[%c0_1, %c0_2] : memref<160x128xf32, #tpu.memory_space<vmem>>, vector<160x128xf32>
    %cst = arith.constant dense<0.000000e+00> : vector<32x128xf32>
    %15 = tpu.matmul %13, %14, %cst {dimension_numbers = #tpu.dot_dimension_numbers<[1], [0], [0], [1], [0, 0, 1, 1], [], []>} : vector<32x160xf32>, vector<160x128xf32>, vector<32x128xf32> -> vector<32x128xf32>
    %16 = vector.shape_cast %15 : vector<32x128xf32> to vector<2x16x128xf32>
    %c0_3 = arith.constant 0 : index
    %c0_4 = arith.constant 0 : index
    %17 = vector.load %arg4[%c0_3, %c0_4] : memref<16x128xf32, #tpu.memory_space<vmem>>, vector<16x128xf32>
    %18 = vector.shape_cast %17 : vector<16x128xf32> to vector<1x16x128xf32>
    %19 = vector.broadcast %18 : vector<1x16x128xf32> to vector<2x16x128xf32>
    %20 = arith.addf %16, %19 : vector<2x16x128xf32>
    %cst_5 = arith.constant dense<0xFF800000> : vector<2x128xf32>
    %21 = vector.multi_reduction <maximumf>, %20, %cst_5 [1] : vector<2x16x128xf32> to vector<2x128xf32>
    %c0_6 = arith.constant 0 : index
    %c0_7 = arith.constant 0 : index
    %22 = vector.load %arg3[%c0_6, %c0_7] : memref<1x128xf32, #tpu.memory_space<vmem>>, vector<1x128xf32>
    %23 = vector.broadcast %22 : vector<1x128xf32> to vector<2x128xf32>
    %24 = arith.addf %21, %23 : vector<2x128xf32>
    %25 = arith.negf %24 : vector<2x128xf32>
    %26 = math.exp %25 : vector<2x128xf32>
    %cst_8 = arith.constant 1.000000e+00 : f32
    %27 = vector.broadcast %cst_8 : f32 to vector<2x128xf32>
    %28 = arith.addf %27, %26 : vector<2x128xf32>
    %29 = arith.divf %27, %28 : vector<2x128xf32>
    %c0_9 = arith.constant 0 : index
    %c0_10 = arith.constant 0 : index
    %30 = vector.load %arg5[%c0_9, %c0_10] : memref<128x128xf32, #tpu.memory_space<vmem>>, vector<128x128xf32>
    %cst_11 = arith.constant dense<0.000000e+00> : vector<2x128xf32>
    %31 = tpu.matmul %29, %30, %cst_11 {dimension_numbers = #tpu.dot_dimension_numbers<[1], [0], [0], [1], [0, 0, 1, 1], [], []>} : vector<2x128xf32>, vector<128x128xf32>, vector<2x128xf32> -> vector<2x128xf32>
    %c0_12 = arith.constant 0 : index
    %c0_13 = arith.constant 0 : index
    %32 = vector.load %arg6[%c0_12, %c0_13] : memref<1x128xf32, #tpu.memory_space<vmem>>, vector<1x128xf32>
    %33 = vector.broadcast %32 : vector<1x128xf32> to vector<2x128xf32>
    %34 = arith.addf %31, %33 : vector<2x128xf32>
    %35 = arith.negf %34 : vector<2x128xf32>
    %36 = math.exp %35 : vector<2x128xf32>
    %cst_14 = arith.constant 1.000000e+00 : f32
    %37 = vector.broadcast %cst_14 : f32 to vector<2x128xf32>
    %38 = arith.addf %37, %36 : vector<2x128xf32>
    %39 = arith.divf %37, %38 : vector<2x128xf32>
    %c0_15 = arith.constant 0 : index
    %c0_16 = arith.constant 0 : index
    %40 = vector.load %arg7[%c0_15, %c0_16] : memref<2x128xf32, #tpu.memory_space<vmem>>, vector<2x128xf32>
    tpu.vector_store %arg7[%c0_15, %c0_16], %39 {strides = array<i32>} : memref<2x128xf32, #tpu.memory_space<vmem>>, vector<2x128xf32>,
    return
  }
  func.func @transform_0(%arg0: i32) -> (i32, i32) {
    %c0_i32 = arith.constant 0 : i32
    %c0_i32_0 = arith.constant 0 : i32
    return %arg0, %c0_i32 : i32, i32
  }
  func.func @transform_1(%arg0: i32) -> (i32, i32) {
    %c0_i32 = arith.constant 0 : i32
    %c0_i32_0 = arith.constant 0 : i32
    %c0_i32_1 = arith.constant 0 : i32
    return %c0_i32, %c0_i32_0 : i32, i32
  }
  func.func @transform_2(%arg0: i32) -> (i32, i32) {
    %c0_i32 = arith.constant 0 : i32
    %c0_i32_0 = arith.constant 0 : i32
    %c0_i32_1 = arith.constant 0 : i32
    return %c0_i32, %c0_i32_0 : i32, i32
  }
  func.func @transform_3(%arg0: i32) -> (i32, i32) {
    %c0_i32 = arith.constant 0 : i32
    %c0_i32_0 = arith.constant 0 : i32
    %c0_i32_1 = arith.constant 0 : i32
    return %c0_i32, %c0_i32_0 : i32, i32
  }
  func.func @transform_4(%arg0: i32) -> (i32, i32) {
    %c0_i32 = arith.constant 0 : i32
    %c0_i32_0 = arith.constant 0 : i32
    %c0_i32_1 = arith.constant 0 : i32
    return %c0_i32, %c0_i32_0 : i32, i32
  }
  func.func @transform_5(%arg0: i32) -> (i32, i32) {
    %c0_i32 = arith.constant 0 : i32
    %c0_i32_0 = arith.constant 0 : i32
    %c0_i32_1 = arith.constant 0 : i32
    return %c0_i32, %c0_i32_0 : i32, i32
  }
  func.func @transform_6(%arg0: i32) -> (i32, i32) {
    %c0_i32 = arith.constant 0 : i32
    %c0_i32_0 = arith.constant 0 : i32
    return %arg0, %c0_i32 : i32, i32
  }
}

</mosaic_0001>

<bundles_post_ra>
// kernel: textcnn_forward.1
= control target key start
LH: loop header
LB: loop body
LE: loop exit
PB: predicated region body
PF: predicated region fallthrough
CT: control target
= control target key end

     0   :  { %vm54_vm0 = vcmask 1044480   ;;  %vm32_vm1 = vcmask 1046528   ;;  %vm43_vm2 = vcmask 1045504   ;;  %s445_s8 = smov 96   ;;  %s446_s17 = smov 32   ;;  %s700_s0 = inlined_call_operand.vmem [shape: f32[32,32], index: 0, kind: input, shape index: {}]   ;;  %s701_s1 = inlined_call_operand.vmem [shape: f32[160,128], index: 1, kind: input, shape index: {}]   ;;  %s702_s2 = inlined_call_operand.vmem [shape: f32[1,128], index: 2, kind: input, shape index: {}]   ;;  %s703_s3 = inlined_call_operand.vmem [shape: f32[16,128], index: 3, kind: input, shape index: {}]   ;;  %s704_s4 = inlined_call_operand.vmem [shape: f32[128,128], index: 4, kind: input, shape index: {}]   ;;  %s705_s5 = inlined_call_operand.vmem [shape: f32[1,128], index: 5, kind: input, shape index: {}]   ;;  %s706_s6 = inlined_call_operand.hbm [shape: f32[2,128], index: 6, kind: output, shape index: {}]  }
   0x1   :  { %v487_v0 = vld [vmem:[%s700_s0 + $0x10] sm:$0xff]  ;;  %v492_v1 = vld [vmem:[%s700_s0 + $0x18] sm:$0xff]  ;;  %v497_v2 = vld [vmem:[%s700_s0] sm:$0xff]  ;;  %s447_s18 = smov 64  }
   0x2   :  { %v58_v3 = vrot.slane %v487_v0, 3  ;;  %v60_v4 = vrot.slane %v492_v1, 3  ;;  %v504_v5 = vld [vmem:[%s700_s0 + $0x8] sm:$0xff]  ;;  %v33_v6 = vrot.slane %v497_v2, 1  ;;  %v36_v7 = vrot.slane %v487_v0, 1  ;;  %v145_v10 = vld [vmem:[%s701_s1 + $0x78] sm:$0xff] }
   0x3   :  { %v34_v8 = vrot.slane %v504_v5, 1  ;;  %v38_v9 = vrot.slane %v492_v1, 1  ;;  %v44_v12 = vrot.slane %v497_v2, 2  ;;  %v45_v13 = vrot.slane %v504_v5, 2  ;;  %159 = vmatpush.msra.mxu0 %v145_v10  ;;  %370 = vmatpush.msra.mxu3 %v145_v10  ;;  %v144_v14 = vld [vmem:[%s701_s1 + $0x70] sm:$0xff]  ;;  %v143_v20 = vld [vmem:[%s701_s1 + $0x68] sm:$0xff] }
   0x4   :  { %v61_v11 = vsel %vm54_vm0, %v58_v3, %v60_v4  ;;  %v47_v17 = vrot.slane %v487_v0, 2  ;;  %v49_v18 = vrot.slane %v492_v1, 2  ;;  %v149_v21 = vld [vmem:[%s701_s1 + $0x98] sm:$0xff]  ;;  %v55_v23 = vrot.slane %v497_v2, 3  ;;  %v142_v25 = vld [vmem:[%s701_s1 + $0x60] sm:$0xff]  ;;  %v148_v26 = vld [vmem:[%s701_s1 + $0x90] sm:$0xff] }
   0x5   :  { %107 = vrot.lane.b32.xlu1 %v61_v11, %s445_s8  ;;  %v35_v15 = vsel %vm32_vm1, %v33_v6, %v34_v8  ;;  %v39_v16 = vsel %vm32_vm1, %v36_v7, %v38_v9  ;;  %160 = vmatpush.msra.mxu0 %v144_v14  ;;  %v56_v24 = vrot.slane %v504_v5, 3  ;;  %v46_v27 = vsel %vm43_vm2, %v44_v12, %v45_v13  ;;  %v147_v31 = vld [vmem:[%s701_s1 + $0x88] sm:$0xff] }
   0x6   :  { %v390_v19 = vpack.i.bf16 %v35_v15, %v39_v16  ;;  %v53_v22 = vsel %vm43_vm2, %v49_v18, %v44_v12  ;;  %371 = vmatpush.msra.mxu3 %v144_v14  ;;  %200 = vmatpush.msra.mxu1 %v149_v21  ;;  %v50_v28 = vsel %vm43_vm2, %v47_v17, %v49_v18 }
   0x7   :  { %96 = vrot.lane.b32.xlu2 %v53_v22, %s447_s18  ;;  %v57_v29 = vsel %vm54_vm0, %v55_v23, %v56_v24  ;;  %v64_v30 = vsel %vm54_vm0, %v60_v4, %v55_v23  ;;  %161 = vmatpush.msra.mxu0 %v143_v20 }
   0x8   :  { %391 = vrot.lane.b32.xlu0 %v390_v19, %s446_s17  ;;  %372 = vmatpush.msra.mxu3 %v143_v20 }
   0x9   :  { %11 = vsyncpa [#allocation3], 0  ;;  %v42_v32 = vsel %vm32_vm1, %v38_v9, %v33_v6  ;;  %v141_v33 = vld [vmem:[%s701_s1 + $0x58] sm:$0xff]  ;;  %201 = vmatpush.msra.mxu1 %v148_v26  ;;  %162 = vmatpush.msra.mxu0 %v142_v25  ;;  %v395_v34 = vpack.i.bf16 %v46_v27, %v50_v28  ;;  %v400_v35 = vpack.i.bf16 %v64_v30, %v57_v29  ;;  %v140_v36 = vld [vmem:[%s701_s1 + $0x50] sm:$0xff]  ;;  %v66_v44 = vrot.slane %v497_v2, 4  ;;  %s448_s7 = smov [#allocation2]  }
   0xa   :  { %373 = vmatpush.msra.mxu3 %v142_v25  ;;  %v139_v37 = vld [vmem:[%s701_s1 + $0x48] sm:$0xff]  ;;  %v138_v38 = vld [vmem:[%s701_s1 + $0x40] sm:$0xff]  ;;  %v48_v39 = vsel %vm43_vm2, %v45_v13, %v47_v17  ;;  %v137_v40 = vld [vmem:[%s701_s1 + $0x38] sm:$0xff]  ;;  %v37_v41 = vsel %vm32_vm1, %v34_v8, %v36_v7  ;;  %v59_v42 = vsel %vm54_vm0, %v56_v24, %v58_v3  ;;  %v67_v45 = vrot.slane %v504_v5, 4  ;;  %s352_s9 = sshll.u32 %s448_s7, 4  ;;  %s353_s9 = int_to_ptr.vmem [resolvable:$true] %s352_s9 }
   0xb   :  { %202 = vmatpush.msra.mxu1 %v147_v31  ;;  %163 = vmatpush.msra.mxu0 %v141_v33  ;;  %v136_v43 = vld [vmem:[%s701_s1 + $0x30] sm:$0xff]  ;;  %v135_v46 = vld [vmem:[%s701_s1 + $0x28] sm:$0xff]  ;;  %v146_v47 = vld [vmem:[%s701_s1 + $0x80] sm:$0xff]  ;;  %vm65_vm3 = vcmask 1043456   ;;  %vm115_vm4 = vcmask 261120   ;;  %v69_v52 = vrot.slane %v487_v0, 4 }
   0xc   :  { %374 = vmatpush.msra.mxu3 %v141_v33  ;;  %v134_v48 = vld [vmem:[%s701_s1 + $0x20] sm:$0xff]  ;;  %v68_v49 = vsel %vm65_vm3, %v66_v44, %v67_v45  ;;  %v133_v50 = vld [vmem:[%s701_s1 + $0x18] sm:$0xff]  ;;  %v132_v51 = vld [vmem:[%s701_s1 + $0x10] sm:$0xff]  ;;  %v71_v56 = vrot.slane %v492_v1, 4  ;;  %vm120_vm5 = vcmask 523264   ;;  %vm125_vm6 = vcmask 785408  }
   0xd   :  { %83 = vrot.lane.b32.xlu1 %v42_v32, %s446_s17  ;;  %164 = vmatpush.msra.mxu0 %v140_v36  ;;  %v131_v53 = vld [vmem:[%s701_s1 + $0x8] sm:$0xff]  ;;  %v130_v54 = vld [vmem:[%s701_s1] sm:$0xff]  ;;  %v70_v55 = vsel %vm65_vm3, %v67_v45, %v69_v52  ;;  %v296_v27 = vld [vmem:[%s704_s4 + $0x78] sm:$0xff]  ;;  %vm304_vm14 = vcmask 1041409  }
   0xe   :  { %375 = vmatpush.msra.mxu3 %v140_v36  ;;  %203 = vmatpush.msra.mxu1 %v146_v47  ;;  %v72_v57 = vsel %vm65_vm3, %v69_v52, %v71_v56  ;;  %v75_v58 = vsel %vm65_vm3, %v71_v56, %v66_v44  ;;  %v294_v29 = vld [vmem:[%s704_s4 + $0x68] sm:$0xff]  ;;  %v217_v31 = vld [vmem:[%s703_s3] sm:$0xff]  ;;  %v292_v36 = vld [vmem:[%s704_s4 + $0x58] sm:$0xff] }
   0xf   :  { %401 = vrot.lane.b32.xlu2 %v400_v35, %s445_s8  ;;  %165 = vmatpush.msra.mxu0 %v139_v37  ;;  %v218_v33 = vld [vmem:[%s703_s3 + $0x8] sm:$0xff]  ;;  %v289_v45 = vld [vmem:[%s704_s4 + $0x40] sm:$0xff]  ;;  %v287_v52 = vld [vmem:[%s704_s4 + $0x30] sm:$0xff] }
  0x10   :  { %396 = vrot.lane.b32.xlu0 %v395_v34, %s447_s18  ;;  %376 = vmatpush.msra.mxu3 %v139_v37  ;;  %v293_v34 = vld [vmem:[%s704_s4 + $0x60] sm:$0xff]  ;;  %v290_v44 = vld [vmem:[%s704_s4 + $0x48] sm:$0xff] }
  0x11   :  { %166 = vmatpush.msra.mxu0 %v138_v38  ;;  %363 = vmatmul.msk.f32.vlgmr.msra.gmra.mxu1 %vm115_vm4, %v68_v49 }
  0x12   :  { %377 = vmatpush.msra.mxu3 %v138_v38  ;;  %307 = vmatpush.msra.mxu2 %v296_v27 }
  0x13   :  { %167 = vmatpush.msra.mxu0 %v137_v40 }
  0x14   :  { %378 = vmatpush.msra.mxu3 %v137_v40  ;;  %v291_v40 = vld [vmem:[%s704_s4 + $0x50] sm:$0xff] }
  0x15   :  { %92 = vrot.lane.b32.xlu1 %v48_v39, %s447_s18  ;;  %168 = vmatpush.msra.mxu0 %v136_v43 }
  0x16   :  { %379 = vmatpush.msra.mxu3 %v136_v43 }
  0x17   :  { %105 = vrot.lane.b32.xlu2 %v59_v42, %s445_s8  ;;  %169 = vmatpush.msra.mxu0 %v135_v46 }
  0x18   :  { %79 = vrot.lane.b32.xlu0 %v37_v41, %s446_s17  ;;  %380 = vmatpush.msra.mxu3 %v135_v46 }
  0x19   :  { %170 = vmatpush.msra.mxu0 %v134_v48  ;;  %364 = vmatmul.msk.f32.gmra.mxu1 %vm115_vm4, %v70_v55  ;;  %v286_v55 = vld [vmem:[%s704_s4 + $0x28] sm:$0xff] }
  0x1a   :  { %381 = vmatpush.msra.mxu3 %v134_v48  ;;  %v288_v48 = vld [vmem:[%s704_s4 + $0x38] sm:$0xff] }
  0x1b   :  { %171 = vmatpush.msra.mxu0 %v133_v50 }
  0x1c   :  { %382 = vmatpush.msra.mxu3 %v133_v50 }
  0x1d   :  { %172 = vmatpush.msra.mxu0 %v132_v51 }
  0x1e   :  { %383 = vmatpush.msra.mxu3 %v132_v51 }
  0x1f   :  { %173 = vmatpush.msra.mxu0 %v131_v53 }
  0x20   :  { %384 = vmatpush.msra.mxu3 %v131_v53 }
  0x21   :  { %174 = vmatpush.msra.mxu0 %v130_v54  ;;  %365 = vmatmul.msk.f32.gmra.mxu1 %vm115_vm4, %v72_v57 }
  0x22   :  { %385 = vmatpush.msra.mxu3 %v130_v54 }
  0x29   :  { %366 = vmatmul.msk.f32.gmra.mxu1 %vm115_vm4, %v75_v58  ;;  %v285_v58 = vld [vmem:[%s704_s4 + $0x20] sm:$0xff] }
  0x61   :  { %v97_v59 = vpop.permute.xlu2 %96 }
  0x69   :  { %v402_v62 = vpop.permute.xlu2 %401 }
  0x6a   :  { %v403_v6 = vunpack.i.l.bf16 %v402_v62  ;;  %v404_v18 = vunpack.i.h.bf16 %v402_v62  ;;  %v284_v62 = vld [vmem:[%s704_s4 + $0x18] sm:$0xff] }
  0x77   :  { %v108_v60 = vpop.permute.xlu1 %107 }
  0x7a   :  { %v392_v61 = vpop.permute.xlu0 %391 }
  0x7b   :  { %v394_v63 = vunpack.i.h.bf16 %v392_v61  ;;  %v393_v3 = vunpack.i.l.bf16 %v392_v61 }
  0x7d   :  { %v116_v10 = vsel %vm115_vm4, %v497_v2, %v394_v63  ;;  %v118_v11 = vsel %vm115_vm4, %v487_v0, %v393_v3  ;;  %v106_v2 = vpop.permute.xlu2 %105 }
  0x7f   :  { %v84_v4 = vpop.permute.xlu1 %83 }
  0x80   :  { %v119_v16 = vsel %vm115_vm4, %v492_v1, %v84_v4  ;;  %v283_v4 = vld [vmem:[%s704_s4 + $0x10] sm:$0xff] }
  0x81   :  { %v124_v20 = vsel %vm120_vm5, %v119_v16, %v97_v59 }
  0x82   :  { %v397_v7 = vpop.permute.xlu0 %396  ;;  %v129_v23 = vsel %vm125_vm6, %v124_v20, %v404_v18 }
  0x83   :  { %v399_v8 = vunpack.i.h.bf16 %v397_v7  ;;  %v398_v9 = vunpack.i.l.bf16 %v397_v7 }
  0x85   :  { %v121_v12 = vsel %vm120_vm5, %v116_v10, %v399_v8  ;;  %v123_v13 = vsel %vm120_vm5, %v118_v11, %v398_v9  ;;  %v282_v8 = vld [vmem:[%s704_s4 + $0x8] sm:$0xff]  ;;  %v281_v11 = vld [vmem:[%s704_s4] sm:$0xff] }
  0x86   :  { %v126_v14 = vsel %vm125_vm6, %v121_v12, %v403_v6  ;;  %v128_v15 = vsel %vm125_vm6, %v123_v13, %v108_v60  ;;  %v405_v60 = vld [vmem:[%s702_s2] ss:$0 sm:$0xff] }
  0x87   :  { %175 = vmatmul.f32.vlgmr.msra.gmra.mxu0 %v126_v14  ;;  %181 = vmatmul.f32.vlgmr.msra.gmra.mxu3 %v128_v15  ;;  %v93_v17 = vpop.permute.xlu1 %92 }
  0x8a   :  { %v80_v19 = vpop.permute.xlu0 %79 }
  0x8b   :  { %v117_v0 = vsel %vm115_vm4, %v504_v5, %v80_v19  ;;  %v295_v5 = vld [vmem:[%s704_s4 + $0x70] sm:$0xff] }
  0x8c   :  { %v122_v21 = vsel %vm120_vm5, %v117_v0, %v93_v17  ;;  %308 = vmatpush.msra.mxu2 %v295_v5 }
  0x8d   :  { %v127_v22 = vsel %vm125_vm6, %v122_v21, %v106_v2 }
  0x8e   :  { %v205_v24 = vpop.f32.mrf.mxu1  ;;  %309 = vmatpush.msra.mxu2 %v294_v29 }
  0x8f   :  { %178 = vmatmul.f32.gmra.mxu0 %v127_v22  ;;  %184 = vmatmul.f32.gmra.mxu3 %v129_v23 }
  0x90   :  { %310 = vmatpush.msra.mxu2 %v293_v34 }
  0x92   :  { %311 = vmatpush.msra.mxu2 %v292_v36 }
  0x94   :  { %312 = vmatpush.msra.mxu2 %v291_v40 }
  0x96   :  { %v208_v25 = vpop.f32.mrf.mxu1  ;;  %313 = vmatpush.msra.mxu2 %v290_v44 }
  0x98   :  { %314 = vmatpush.msra.mxu2 %v289_v45 }
  0x9a   :  { %315 = vmatpush.msra.mxu2 %v288_v48 }
  0x9c   :  { %316 = vmatpush.msra.mxu2 %v287_v52 }
  0x9e   :  { %v211_v26 = vpop.f32.mrf.mxu1  ;;  %317 = vmatpush.msra.mxu2 %v286_v55 }
  0xa0   :  { %318 = vmatpush.msra.mxu2 %v285_v58 }
  0xa2   :  { %319 = vmatpush.msra.mxu2 %v284_v62 }
  0xa4   :  { %320 = vmatpush.msra.mxu2 %v283_v4 }
  0xa6   :  { %v214_v39 = vpop.f32.mrf.mxu1  ;;  %321 = vmatpush.msra.mxu2 %v282_v8 }
  0xa8   :  { %322 = vmatpush.msra.mxu2 %v281_v11 }
 0x104   :  { %v176_v1 = vpop.f32.mrf.mxu0 }
 0x105   :  { %v206_v30 = vadd.f32 %v205_v24, %v176_v1 }
 0x107   :  { %v219_v37 = vadd.f32 %v217_v31, %v206_v30 }
 0x10a   :  { %v182_v28 = vpop.f32.mrf.mxu3 }
 0x10b   :  { %v212_v41 = vadd.f32 %v211_v26, %v182_v28 }
 0x10c   :  { %v179_v32 = vpop.f32.mrf.mxu0 }
 0x10d   :  { %v209_v35 = vadd.f32 %v208_v25, %v179_v32  ;;  %v221_v49 = vadd.f32 %v217_v31, %v212_v41 }
 0x10f   :  { %v220_v38 = vadd.f32 %v218_v33, %v209_v35 }
 0x111   :  { %v223_v42 = vmax.f32 %v219_v37, %v220_v38  ;;  %v406_v37 = vld [vmem:[%s705_s5] ss:$0 sm:$0xff]  ;;  %s354_s5 = sshll.u32 %s706_s6, 4  ;;  %s355_s5 = int_to_ptr.hbm [resolvable:$true] %s354_s5 }
 0x112   :  { %v185_v43 = vpop.f32.mrf.mxu3 }
 0x113   :  { %v224_v46 = vrot.slane %v223_v42, 4  ;;  %v215_v47 = vadd.f32 %v214_v39, %v185_v43 }
 0x115   :  { %v225_v50 = vmax.f32 %v223_v42, %v224_v46  ;;  %v222_v51 = vadd.f32 %v218_v33, %v215_v47 }
 0x117   :  { %v226_v53 = vrot.slane %v225_v50, 2  ;;  %v230_v54 = vmax.f32 %v221_v49, %v222_v51 }
 0x119   :  { %v227_v56 = vmax.f32 %v225_v50, %v226_v53  ;;  %v231_v57 = vrot.slane %v230_v54, 4 }
 0x11b   :  { %v228_v59 = vrot.slane %v227_v56, 1  ;;  %v232_v61 = vmax.f32 %v230_v54, %v231_v57 }
 0x11d   :  { %v229_v63 = vmax.f32 %v227_v56, %v228_v59  ;;  %v233_v3 = vrot.slane %v232_v61, 2 }
 0x11f   :  { %v241_v6 = vadd.f32 %v405_v60, %v229_v63  ;;  %v234_v7 = vmax.f32 %v232_v61, %v233_v3 }
 0x121   :  { %v367_v9 = vmul.f32 -1.442695, %v241_v6  ;;  %v235_v10 = vrot.slane %v234_v7, 1 }
 0x123   :  { %407 = vpow2.f32 %v367_v9  ;;  %v236_v12 = vmax.f32 %v234_v7, %v235_v10 }
 0x125   :  { %v242_v13 = vadd.f32 %v405_v60, %v236_v12 }
 0x127   :  { %v368_v14 = vmul.f32 -1.442695, %v242_v13 }
 0x129   :  { %v408_v15 = vpop.eup %407  ;;  %409 = vpow2.f32 %v368_v14 }
 0x12a   :  { %v249_v16 = vadd.f32 1.0, %v408_v15 }
 0x12c   :  { %411 = vrcp.f32 %v249_v16  ;;  %vm256_vm9 = vweird.f32 %v249_v16  ;;  %v262_v27 = vand.u32 2147483648, %v249_v16  ;;  %v260_v5 = vand.u32 2147483647, %v249_v16 }
 0x12e   :  { %v263_v32 = vor.u32 1.1754944e-38, %v262_v27  ;;  %vm261_vm15 = vcmp.eq.f32.partialorder %v260_v5, 8.507059e+37 }
 0x12f   :  { %v410_v17 = vpop.eup %409 }
 0x130   :  { %v250_v18 = vadd.f32 1.0, %v410_v17 }
 0x132   :  { %v412_v19 = vpop.eup %411  ;;  %413 = vrcp.f32 %v250_v18  ;;  %v277_v24 = vand.u32 2147483648, %v250_v18  ;;  %v275_v26 = vand.u32 2147483647, %v250_v18  ;;  %vm271_vm11 = vweird.f32 %v250_v18 }
 0x133   :  { %v252_v2 = vmul.f32 %v412_v19, %v249_v16  ;;  %vm257_vm7 = vweird.f32 %v412_v19 }
 0x134   :  { %vm258_vm10 = vmor %vm256_vm9, %vm257_vm7  ;;  %v278_v29 = vor.u32 1.1754944e-38, %v277_v24  ;;  %vm276_vm13 = vcmp.eq.f32.partialorder %v275_v26, 8.507059e+37 }
 0x135   :  { %v253_v0 = vsub.f32 1.0, %v252_v2 }
 0x137   :  { %v254_v21 = vmul.f32 %v412_v19, %v253_v0 }
 0x138   :  { %v414_v20 = vpop.eup %413 }
 0x139   :  { %v267_v22 = vmul.f32 %v414_v20, %v250_v18  ;;  %v255_v25 = vadd.f32 %v412_v19, %v254_v21  ;;  %vm272_vm8 = vweird.f32 %v414_v20 }
 0x13a   :  { %vm273_vm12 = vmor %vm271_vm11, %vm272_vm8 }
 0x13b   :  { %v268_v23 = vsub.f32 1.0, %v267_v22  ;;  %v259_v30 = vsel %vm258_vm10, %v412_v19, %v255_v25 }
 0x13c   :  { %v264_v35 = vsel %vm261_vm15, %v263_v32, %v259_v30 }
 0x13d   :  { %v269_v1 = vmul.f32 %v414_v20, %v268_v23 }
 0x13f   :  { %v270_v28 = vadd.f32 %v414_v20, %v269_v1 }
 0x141   :  { %v274_v31 = vsel %vm273_vm12, %v414_v20, %v270_v28 }
 0x142   :  { %v279_v33 = vsel %vm276_vm13, %v278_v29, %v274_v31 }
 0x143   :  { %v303_v34 = vrot.slane %v279_v33, 7 }
 0x145   :  { %v305_v36 = vsel %vm304_vm14, %v303_v34, %v264_v35 }
 0x146   :  { %323 = vmatmul.f32.vlgmr.msra.gmra.mxu2 %v305_v36 }
 0x1c9   :  { %v324_v38 = vpop.f32.mrf.mxu2 }
 0x1ca   :  { %v325_v39 = vadd.f32 %v406_v37, %v324_v38 }
 0x1cc   :  { %v369_v40 = vmul.f32 -1.442695, %v325_v39 }
 0x1ce   :  { %415 = vpow2.f32 %v369_v40 }
 0x1d4   :  { %v416_v41 = vpop.eup %415 }
 0x1d5   :  { %v330_v42 = vadd.f32 1.0, %v416_v41 }
 0x1d7   :  { %417 = vrcp.f32 %v330_v42  ;;  %v342_v46 = vand.u32 2147483648, %v330_v42  ;;  %v340_v48 = vand.u32 2147483647, %v330_v42  ;;  %vm336_vm1 = vweird.f32 %v330_v42 }
 0x1d9   :  { %v343_v50 = vor.u32 1.1754944e-38, %v342_v46  ;;  %vm341_vm3 = vcmp.eq.f32.partialorder %v340_v48, 8.507059e+37 }
 0x1dd   :  { %v418_v43 = vpop.eup %417 }
 0x1de   :  { %v332_v44 = vmul.f32 %v418_v43, %v330_v42  ;;  %vm337_vm0 = vweird.f32 %v418_v43 }
 0x1df   :  { %vm338_vm2 = vmor %vm336_vm1, %vm337_vm0 }
 0x1e0   :  { %v333_v45 = vsub.f32 1.0, %v332_v44 }
 0x1e2   :  { %v334_v47 = vmul.f32 %v418_v43, %v333_v45 }
 0x1e4   :  { %v335_v49 = vadd.f32 %v418_v43, %v334_v47 }
 0x1e6   :  { %v339_v51 = vsel %vm338_vm2, %v418_v43, %v335_v49 }
 0x1e7   :  { %v344_v52 = vsel %vm341_vm3, %v343_v50, %v339_v51 }
 0x1e8   :  { %346 = vst [vmem:[#allocation2] sm:$0x3] %v344_v52 }
 0x1e9   :  { %357 = dma.vmem_to_hbm [thread:$0]  %s353_s9, 32, %s355_s5, [#allocation3]  }
 0x1ea   :  { %443 = dma.done.wait [#allocation3], 32  }
 0x1eb   :  { %444 = vsyncadd [#allocation3], 4294967264 }
 0x1ec   :  { %362 = vsyncpa [#allocation3], 1 }

</bundles_post_ra>
